<compile_context>
chip_gen: v5e
topology: v5e:2x2
jax: 0.10.0
libtpu: 0.0.40
codegen_flags: <defaults>
</compile_context>

<pallas_src>
import jax
import jax.numpy as jnp
from jax.experimental import pallas as pl
from jax.experimental.pallas import tpu as pltpu

IN_FEATURES = 300
OUT_FEATURES = 4


def linear_kernel(x_ref, w_ref, b_ref, o_ref):
    # Hot path: single MXU matmul + bias broadcast-add, all in VMEM.
    x = x_ref[...]                      # (TB, 300)
    w = w_ref[...]                      # (300, 4)  resident across grid steps
    b = b_ref[...]                      # (1, 4)    resident across grid steps
    acc = jnp.dot(x, w, preferred_element_type=jnp.float32)   # (TB, 4)
    o_ref[...] = (acc + b).astype(o_ref.dtype)


def logistic_regression_forward(x, weight, bias, *, tb=2048):
    """x: (B, 300) f32; weight: (4, 300) f32 (torch layout); bias: (4,) f32.

    tb notes per chip (see review):
      * v5e: keep tb <= 2048 (16 MiB default scoped VMEM).
      * v6e: tb=4096 also fits the 32 MiB default and shaves a few more %.
      * v7x: tb=4096 fits; beyond ~6144 needs vmem_limit_bytes and headroom.
    """
    assert tb % 8 == 0, "batch tile must be a multiple of 8 (sublane)"
    B = x.shape[0]
    w_t = weight.T                       # (300, 4) for MXU-friendly contraction
    b2d = bias.reshape(1, OUT_FEATURES)  # 2D for TPU layout

    # Clamp the tile to the (8-rounded) batch so tiny batches don't allocate a
    # huge VMEM buffer. TB stays a multiple of 8 -> satisfies the sublane rule.
    TB = min(tb, ((B + 7) // 8) * 8)
    grid = (pl.cdiv(B, TB),)             # ragged last block handled by Pallas

    cost = pl.CostEstimate(
        flops=2 * B * IN_FEATURES * OUT_FEATURES,
        transcendentals=0,
        bytes_accessed=(
            B * IN_FEATURES * 4               # X streamed once (no pad copy)
            + IN_FEATURES * OUT_FEATURES * 4  # W fetched once
            + OUT_FEATURES * 4                # bias fetched once
            + B * OUT_FEATURES * 4            # output written once
        ),
    )

    out = pl.pallas_call(
        linear_kernel,
        out_shape=jax.ShapeDtypeStruct((B, OUT_FEATURES), jnp.float32),
        grid_spec=pltpu.PrefetchScalarGridSpec(
            num_scalar_prefetch=0,
            grid=grid,
            in_specs=[
                # X: streamed tile-by-tile over the batch (double-buffered).
                pl.BlockSpec((TB, IN_FEATURES), lambda i: (i, 0)),
                # W / bias: constant index_map -> stay resident in VMEM.
                pl.BlockSpec((IN_FEATURES, OUT_FEATURES), lambda i: (0, 0)),
                pl.BlockSpec((1, OUT_FEATURES), lambda i: (0, 0)),
            ],
            out_specs=pl.BlockSpec((TB, OUT_FEATURES), lambda i: (i, 0)),
        ),
        compiler_params=pltpu.CompilerParams(
            # Batch tiles are independent -> shard across both TCs on v7x.
            dimension_semantics=("parallel",),
        ),
        cost_estimate=cost,
    )(x, w_t, b2d)

    return out


if __name__ == "__main__":
    key = jax.random.PRNGKey(0)
    k_x, k_w, k_b = jax.random.split(key, 3)

    # Deterministic init mimicking torch.nn.Linear: U(-1/sqrt(fan_in), 1/sqrt(fan_in))
    bound = 1.0 / (IN_FEATURES ** 0.5)
    weight = jax.random.uniform(
        k_w, (OUT_FEATURES, IN_FEATURES), minval=-bound, maxval=bound, dtype=jnp.float32
    )
    bias = jax.random.uniform(
        k_b, (OUT_FEATURES,), minval=-bound, maxval=bound, dtype=jnp.float32
    )

    # 1) Small batch (clamped single-block path), consistent with the module spec.
    B_small = 2
    x_small = jax.random.normal(k_x, (B_small, IN_FEATURES), dtype=jnp.float32)
    out_small = jax.block_until_ready(logistic_regression_forward(x_small, weight, bias))
    ref_small = x_small @ weight.T + bias
    assert out_small.shape == (B_small, OUT_FEATURES)
    assert jnp.allclose(out_small, ref_small, atol=1e-5, rtol=1e-5)

    # 2) Larger batch exercising the tiled, pipelined path with a ragged last
    #    block (B not a multiple of TB) and no wrapper-side padding.
    B_big = 2056
    x_big = jax.random.normal(k_x, (B_big, IN_FEATURES), dtype=jnp.float32)
    out_big = jax.block_until_ready(
        logistic_regression_forward(x_big, weight, bias, tb=2048)
    )
    ref_big = x_big @ weight.T + bias
    assert out_big.shape == (B_big, OUT_FEATURES)
    assert jnp.allclose(out_big, ref_big, atol=1e-4, rtol=1e-5)

    print("KERNEL_OK")
</pallas_src>

<mosaic_0001>
module attributes {stable_mosaic.version = 11 : i64} {
  func.func @linear_kernel(%arg0: i32, %arg1: memref<8x300xf32, #tpu.memory_space<vmem>>, %arg2: memref<300x4xf32, #tpu.memory_space<vmem>>, %arg3: memref<1x4xf32, #tpu.memory_space<vmem>>, %arg4: memref<8x4xf32, #tpu.memory_space<vmem>>) attributes {dimension_semantics = [#tpu.dimension_semantics<parallel>], iteration_bounds = array<i64: 1>, scalar_prefetch = 0 : i64, scratch_operands = 0 : i64, tpu.core_type = #tpu.core_type<tc>, window_params = [{transform_indices = @transform_0, window_bounds = array<i64: 8, 300>}, {pipeline_mode = #tpu.pipeline_mode<synchronous>, transform_indices = @transform_1, window_bounds = array<i64: 300, 4>}, {pipeline_mode = #tpu.pipeline_mode<synchronous>, transform_indices = @transform_2, window_bounds = array<i64: 1, 4>}, {transform_indices = @transform_3, window_bounds = array<i64: 8, 4>}]} {
    %c0 = arith.constant 0 : index
    %c0_0 = arith.constant 0 : index
    %0 = vector.load %arg1[%c0, %c0_0] : memref<8x300xf32, #tpu.memory_space<vmem>>, vector<8x300xf32>
    %c0_1 = arith.constant 0 : index
    %c0_2 = arith.constant 0 : index
    %1 = vector.load %arg2[%c0_1, %c0_2] : memref<300x4xf32, #tpu.memory_space<vmem>>, vector<300x4xf32>
    %c0_3 = arith.constant 0 : index
    %c0_4 = arith.constant 0 : index
    %2 = vector.load %arg3[%c0_3, %c0_4] : memref<1x4xf32, #tpu.memory_space<vmem>>, vector<1x4xf32>
    %cst = arith.constant dense<0.000000e+00> : vector<8x4xf32>
    %3 = tpu.matmul %0, %1, %cst {dimension_numbers = #tpu.dot_dimension_numbers<[1], [0], [0], [1], [0, 0, 1, 1], [], []>} : vector<8x300xf32>, vector<300x4xf32>, vector<8x4xf32> -> vector<8x4xf32>
    %4 = vector.broadcast %2 : vector<1x4xf32> to vector<8x4xf32>
    %5 = arith.addf %3, %4 : vector<8x4xf32>
    %c0_5 = arith.constant 0 : index
    %c0_6 = arith.constant 0 : index
    %6 = vector.load %arg4[%c0_5, %c0_6] : memref<8x4xf32, #tpu.memory_space<vmem>>, vector<8x4xf32>
    tpu.vector_store %arg4[%c0_5, %c0_6], %5 {strides = array<i32>} : memref<8x4xf32, #tpu.memory_space<vmem>>, vector<8x4xf32>,
    return
  }
  func.func @transform_0(%arg0: i32) -> (i32, i32) {
    %c0_i32 = arith.constant 0 : i32
    %c0_i32_0 = arith.constant 0 : i32
    return %arg0, %c0_i32 : i32, i32
  }
  func.func @transform_1(%arg0: i32) -> (i32, i32) {
    %c0_i32 = arith.constant 0 : i32
    %c0_i32_0 = arith.constant 0 : i32
    %c0_i32_1 = arith.constant 0 : i32
    return %c0_i32, %c0_i32_0 : i32, i32
  }
  func.func @transform_2(%arg0: i32) -> (i32, i32) {
    %c0_i32 = arith.constant 0 : i32
    %c0_i32_0 = arith.constant 0 : i32
    %c0_i32_1 = arith.constant 0 : i32
    return %c0_i32, %c0_i32_0 : i32, i32
  }
  func.func @transform_3(%arg0: i32) -> (i32, i32) {
    %c0_i32 = arith.constant 0 : i32
    %c0_i32_0 = arith.constant 0 : i32
    return %arg0, %c0_i32 : i32, i32
  }
}

</mosaic_0001>

<bundles_post_ra>
// kernel: tpu_custom_call.1
= control target key start
LH: loop header
LB: loop body
LE: loop exit
PB: predicated region body
PF: predicated region fallthrough
CT: control target
= control target key end

     0   :  { %8 = vsyncpa [#allocation3], 0  ;;  %vm80_vm0 = vcmask 1043456   ;;  %vm77_vm1 = vcmask 359424   ;;  %vm144_vm2 = vcmask 31744   ;;  %s351_s0 = inlined_call_operand.vmem [shape: f32[2,300], index: 0, kind: input, shape index: {}]   ;;  %s352_s1 = inlined_call_operand.vmem [shape: f32[300,4], index: 1, kind: input, shape index: {}]   ;;  %s353_s2 = inlined_call_operand.vmem [shape: f32[1,4], index: 2, kind: input, shape index: {}]   ;;  %s354_s3 = inlined_call_operand.hbm [shape: f32[2,4], index: 3, kind: output, shape index: {}]  }
   0x1   :  { %v34_v0 = vld [vmem:[%s352_s1 + $0x78] sm:$0xff]  ;;  %v33_v1 = vld [vmem:[%s352_s1 + $0x70] sm:$0xff]  ;;  %v32_v4 = vld [vmem:[%s352_s1 + $0x68] sm:$0xff] }
   0x2   :  { %84 = vmatpush.msra.mxu0 %v34_v0  ;;  %v50_v2 = vld [vmem:[%s352_s1 + $0xf8] sm:$0xff]  ;;  %v49_v3 = vld [vmem:[%s352_s1 + $0xf0] sm:$0xff]  ;;  %v48_v5 = vld [vmem:[%s352_s1 + $0xe8] sm:$0xff] }
   0x3   :  { %104 = vmatpush.msra.mxu1 %v50_v2  ;;  %v31_v6 = vld [vmem:[%s352_s1 + $0x60] sm:$0xff]  ;;  %v30_v8 = vld [vmem:[%s352_s1 + $0x58] sm:$0xff]  ;;  %v56_v9 = vld [vmem:[%s352_s1 + $0x128] sm:$0xf] }
   0x4   :  { %85 = vmatpush.msra.mxu0 %v33_v1  ;;  %v47_v7 = vld [vmem:[%s352_s1 + $0xe0] sm:$0xff]  ;;  %v46_v10 = vld [vmem:[%s352_s1 + $0xd8] sm:$0xff]  ;;  %164 = vmatpush.msk.msra.mxu2 %vm80_vm0, %v56_v9  ;;  %v29_v12 = vld [vmem:[%s352_s1 + $0x50] sm:$0xff] }
   0x5   :  { %105 = vmatpush.msra.mxu1 %v49_v3  ;;  %v55_v11 = vld [vmem:[%s352_s1 + $0x120] sm:$0xff]  ;;  %v54_v13 = vld [vmem:[%s352_s1 + $0x118] sm:$0xff]  ;;  %v45_v14 = vld [vmem:[%s352_s1 + $0xd0] sm:$0xff] }
   0x6   :  { %86 = vmatpush.msra.mxu0 %v32_v4  ;;  %135 = vmatpush.msra.mxu2 %v55_v11  ;;  %v28_v15 = vld [vmem:[%s352_s1 + $0x48] sm:$0xff]  ;;  %v53_v16 = vld [vmem:[%s352_s1 + $0x110] sm:$0xff]  ;;  %v27_v17 = vld [vmem:[%s352_s1 + $0x40] sm:$0xff] }
   0x7   :  { %106 = vmatpush.msra.mxu1 %v48_v5  ;;  %v44_v18 = vld [vmem:[%s352_s1 + $0xc8] sm:$0xff]  ;;  %v15_v20 = vld [vmem:[%s351_s0] sm:$0x3f]  ;;  %v18_v24 = vld [vmem:[%s351_s0 + $0x12] sm:$0x3f] }
   0x8   :  { %87 = vmatpush.msra.mxu0 %v31_v6  ;;  %136 = vmatpush.msra.mxu2 %v54_v13  ;;  %v52_v19 = vld [vmem:[%s352_s1 + $0x108] sm:$0xff]  ;;  %v43_v23 = vld [vmem:[%s352_s1 + $0xc0] sm:$0xff]  ;;  %65 = vst [vmem:[#allocation1] ss:$4 sm:$0xff] %v15_v20  ;;  %v26_v25 = vld [vmem:[%s352_s1 + $0x38] sm:$0xff] }
   0x9   :  { %107 = vmatpush.msra.mxu1 %v47_v7  ;;  %v16_v21 = vld [vmem:[%s351_s0 + $0x6] sm:$0x3f]  ;;  %v17_v22 = vld [vmem:[%s351_s0 + $0xc] sm:$0x3f]  ;;  %v42_v27 = vld [vmem:[%s352_s1 + $0xb8] sm:$0xff] }
   0xa   :  { %88 = vmatpush.msra.mxu0 %v30_v8  ;;  %137 = vmatpush.msra.mxu2 %v53_v16  ;;  %v51_v26 = vld [vmem:[%s352_s1 + $0x100] sm:$0xff]  ;;  %67 = vst [vmem:[#allocation1 + $0x1] ss:$4 sm:$0xff] %v16_v21  ;;  %v25_v28 = vld [vmem:[%s352_s1 + $0x30] sm:$0xff]  ;;  %v24_v30 = vld [vmem:[%s352_s1 + $0x28] sm:$0xff] }
   0xb   :  { %108 = vmatpush.msra.mxu1 %v46_v10  ;;  %69 = vst [vmem:[#allocation1 + $0x2] ss:$4 sm:$0xff] %v17_v22  ;;  %v41_v29 = vld [vmem:[%s352_s1 + $0xb0] sm:$0xff]  ;;  %v40_v31 = vld [vmem:[%s352_s1 + $0xa8] sm:$0xff]  ;;  %v23_v32 = vld [vmem:[%s352_s1 + $0x20] sm:$0xff] }
   0xc   :  { %89 = vmatpush.msra.mxu0 %v29_v12  ;;  %138 = vmatpush.msra.mxu2 %v52_v19  ;;  %71 = vst [vmem:[#allocation1 + $0x3] ss:$4 sm:$0xff] %v18_v24  ;;  %v39_v33 = vld [vmem:[%s352_s1 + $0xa0] sm:$0xff]  ;;  %v22_v34 = vld [vmem:[%s352_s1 + $0x18] sm:$0xff]  ;;  %v21_v37 = vld [vmem:[%s352_s1 + $0x10] sm:$0xff] }
   0xd   :  { %109 = vmatpush.msra.mxu1 %v45_v14  ;;  %v38_v35 = vld [vmem:[%s352_s1 + $0x98] sm:$0xff]  ;;  %v37_v38 = vld [vmem:[%s352_s1 + $0x90] sm:$0xff]  ;;  %v20_v39 = vld [vmem:[%s352_s1 + $0x8] sm:$0xff] }
   0xe   :  { %90 = vmatpush.msra.mxu0 %v28_v15  ;;  %139 = vmatpush.msra.mxu2 %v51_v26  ;;  %v36_v40 = vld [vmem:[%s352_s1 + $0x88] sm:$0xff]  ;;  %v19_v41 = vld [vmem:[%s352_s1] sm:$0xff] }
   0xf   :  { %110 = vmatpush.msra.mxu1 %v44_v18  ;;  %v35_v43 = vld [vmem:[%s352_s1 + $0x80] sm:$0xff] }
  0x10   :  { %91 = vmatpush.msra.mxu0 %v27_v17  ;;  %v169_v45 = vld [vmem:[%s353_s2] ss:$0 sm:$0xff] }
  0x11   :  { %111 = vmatpush.msra.mxu1 %v43_v23 }
  0x12   :  { %92 = vmatpush.msra.mxu0 %v26_v25 }
  0x13   :  { %112 = vmatpush.msra.mxu1 %v42_v27  ;;  %v74_v36 = vld.sshfl [vmem:[#allocation1 + $0x10] sm:$0xff pattern:$0x73625140]  ;;  %v72_v42 = vld.sshfl [vmem:[#allocation1] sm:$0xff pattern:$0x73625140] }
  0x14   :  { %93 = vmatpush.msra.mxu0 %v25_v28  ;;  %165 = vmatmul.msk.f32.vlgmr.msra.gmra.mxu2 %vm77_vm1, %v74_v36  ;;  %v73_v44 = vld.sshfl [vmem:[#allocation1 + $0x8] sm:$0xff pattern:$0x73625140] }
  0x15   :  { %113 = vmatpush.msra.mxu1 %v41_v29 }
  0x16   :  { %94 = vmatpush.msra.mxu0 %v24_v30 }
  0x17   :  { %114 = vmatpush.msra.mxu1 %v40_v31 }
  0x18   :  { %95 = vmatpush.msra.mxu0 %v23_v32 }
  0x19   :  { %115 = vmatpush.msra.mxu1 %v39_v33 }
  0x1a   :  { %96 = vmatpush.msra.mxu0 %v22_v34 }
  0x1b   :  { %116 = vmatpush.msra.mxu1 %v38_v35 }
  0x1c   :  { %97 = vmatpush.msra.mxu0 %v21_v37 }
  0x1d   :  { %117 = vmatpush.msra.mxu1 %v37_v38 }
  0x1e   :  { %98 = vmatpush.msra.mxu0 %v20_v39 }
  0x1f   :  { %118 = vmatpush.msra.mxu1 %v36_v40 }
  0x20   :  { %99 = vmatpush.msra.mxu0 %v19_v41 }
  0x21   :  { %100 = vmatmul.f32.vlgmr.msra.gmra.mxu0 %v72_v42  ;;  %119 = vmatpush.msra.mxu1 %v35_v43 }
  0x22   :  { %120 = vmatmul.f32.vlgmr.msra.gmra.mxu1 %v73_v44 }
  0x97   :  { %v141_v49 = vpop.f32.mrf.mxu2 }
  0x9e   :  { %v101_v46 = vpop.f32.mrf.mxu0 }
  0x9f   :  { %v102_v47 = vadd.f32 %v169_v45, %v101_v46  ;;  %v121_v48 = vpop.f32.mrf.mxu1 }
  0xa1   :  { %v122_v50 = vadd.f32 %v121_v48, %v102_v47 }
  0xa3   :  { %v142_v51 = vadd.f32 %v141_v49, %v122_v50 }
  0xa5   :  { %145 = vst.msk [vmem:[#allocation2] sm:$0xff] %vm144_vm2, %v142_v51 }
  0xa6   :  { %149 = vsyncadd [#allocation3], 96  ;;  %s152_s16 = sshll.u32 %s354_s3, 4  ;;  %s196_s17 = smov [#allocation2]   ;;  %s153_s16 = int_to_ptr.hbm [resolvable:$true] %s152_s16 }
  0xa7   :  { %s150_s18 = sshll.u32 %s196_s17, 4  ;;  %s197_s19 = smov 32   ;;  %s151_s18 = int_to_ptr.vmem [resolvable:$true] %s150_s18 }
  0xa8   :  { %s198_s20 = smov 2  }
  0xa9   :  { %158 = dma.vmem_to_hbm [thread:$0]  %s151_s18, 32, %s153_s16, [#allocation3], %s197_s19, %s197_s19, %s198_s20  }
  0xaa   :  { %194 = dma.done.wait [#allocation3], 128  }
  0xab   :  { %195 = vsyncadd [#allocation3], 4294967168 }
  0xac   :  { %163 = vsyncpa [#allocation3], 1 }

</bundles_post_ra>
